<compile_context>
chip_gen: v5e
topology: v5e:2x2
jax: 0.10.0
libtpu: 0.0.40
codegen_flags: <defaults>
</compile_context>

<pallas_src>
import functools

import jax
import jax.numpy as jnp
from jax.experimental import pallas as pl
from jax.experimental.pallas import tpu as pltpu


def _pad8(n):
    return ((n + 7) // 8) * 8


def _packed_layout(half, hidden, n_hidden):
    """Row offsets of each fused-weight segment inside the packed operand.

    Every segment starts on a multiple-of-8 row so in-kernel static slices are
    sublane-aligned.
    """
    h2 = 2 * hidden
    offs = {}
    r = 0
    offs["w_in"] = r
    r += _pad8(half)
    offs["b_in"] = r
    r += 8
    offs["w_hid"] = []
    offs["b_hid"] = []
    for _ in range(n_hidden):
        offs["w_hid"].append(r)
        r += _pad8(h2)
        offs["b_hid"].append(r)
        r += 8
    offs["w_out"] = r
    r += _pad8(h2)
    offs["b_out"] = r
    r += 8
    offs["rows"] = r
    return offs


def affine_coupling_kernel(z_ref, w_ref, o_ref, *, half, hidden, n_hidden):
    h2 = 2 * hidden
    out2 = 2 * half
    offs = _packed_layout(half, hidden, n_hidden)

    left = z_ref[:, :half]           # (bt, half)
    right = z_ref[:, half:]          # (bt, half)

    # Fused MLP: the log_s-net and b-net run side by side in a 2H-wide hidden
    # state; hidden/output weights are block-diagonal so the two paths never
    # mix.  7 dots instead of 14.
    w_in = w_ref[offs["w_in"]:offs["w_in"] + half, :h2]
    b_in = w_ref[offs["b_in"]:offs["b_in"] + 1, :h2]
    h = jnp.maximum(
        jnp.dot(left, w_in, preferred_element_type=jnp.float32) + b_in, 0.0)

    for l in range(n_hidden):        # static trip count, unrolled at trace time
        ow = offs["w_hid"][l]
        ob = offs["b_hid"][l]
        w_l = w_ref[ow:ow + h2, :h2]
        b_l = w_ref[ob:ob + 1, :h2]
        h = jnp.maximum(
            jnp.dot(h, w_l, preferred_element_type=jnp.float32) + b_l, 0.0)

    w_out = w_ref[offs["w_out"]:offs["w_out"] + h2, :out2]
    b_out = w_ref[offs["b_out"]:offs["b_out"] + 1, :out2]
    y = jnp.dot(h, w_out, preferred_element_type=jnp.float32) + b_out

    log_s = y[:, :half]
    b = y[:, half:]
    right_new = right * jnp.exp(log_s) + b

    # One dense full-width store (left passes through unchanged) instead of two
    # masked partial-lane stores.
    o_ref[...] = jnp.concatenate([left, right_new], axis=1).astype(o_ref.dtype)


def make_scale_network_params(key, in_dim, hidden_dim=8, num_hidden_layers=5):
    """Deterministic synthetic weights for one ScaleNetwork."""
    ks = jax.random.split(key, 3 * (num_hidden_layers + 2))
    i = 0

    def nxt():
        nonlocal i
        k = ks[i]
        i += 1
        return k

    scale = 0.3
    w_in = scale * jax.random.normal(nxt(), (in_dim, hidden_dim), jnp.float32)
    b_in = scale * jax.random.normal(nxt(), (1, hidden_dim), jnp.float32)
    w_hid = scale * jax.random.normal(
        nxt(), (num_hidden_layers, hidden_dim, hidden_dim), jnp.float32)
    b_hid = scale * jax.random.normal(
        nxt(), (num_hidden_layers, hidden_dim), jnp.float32)
    w_out = scale * jax.random.normal(nxt(), (hidden_dim, in_dim), jnp.float32)
    b_out = scale * jax.random.normal(nxt(), (1, in_dim), jnp.float32)
    return (w_in, b_in, w_hid, b_hid, w_out, b_out)


def pack_coupling_params(s_params, b_params):
    """Fuse the two ScaleNetworks and pack everything into one (rows, W) slab."""
    s_w_in, s_b_in, s_w_hid, s_b_hid, s_w_out, s_b_out = s_params
    b_w_in, b_b_in, b_w_hid, b_b_hid, b_w_out, b_b_out = b_params
    half, hidden = s_w_in.shape
    n_hidden = s_w_hid.shape[0]
    h2 = 2 * hidden
    out2 = 2 * half
    width = max(h2, out2)
    offs = _packed_layout(half, hidden, n_hidden)
    packed = jnp.zeros((offs["rows"], width), jnp.float32)

    def put(arr, row, block):
        r, c = block.shape
        return arr.at[row:row + r, :c].set(block)

    # fused input layer: concatenate along output axis
    packed = put(packed, offs["w_in"], jnp.concatenate([s_w_in, b_w_in], axis=1))
    packed = put(packed, offs["b_in"], jnp.concatenate([s_b_in, b_b_in], axis=1))

    # fused hidden layers: block-diagonal weights, concatenated biases
    zhh = jnp.zeros((hidden, hidden), jnp.float32)
    for l in range(n_hidden):
        w = jnp.block([[s_w_hid[l], zhh], [zhh, b_w_hid[l]]])
        packed = put(packed, offs["w_hid"][l], w)
        bias = jnp.concatenate([s_b_hid[l], b_b_hid[l]])[None, :]
        packed = put(packed, offs["b_hid"][l], bias)

    # fused output layer: block-diagonal, concatenated bias
    zho = jnp.zeros((hidden, half), jnp.float32)
    w_out = jnp.block([[s_w_out, zho], [zho, b_w_out]])
    packed = put(packed, offs["w_out"], w_out)
    packed = put(packed, offs["b_out"],
                 jnp.concatenate([s_b_out, b_b_out], axis=1))
    return packed


def affine_coupling_forward(z, packed_w, *, half, hidden, n_hidden,
                            batch_tile=512):
    B, D = z.shape
    bt = min(batch_tile, B)
    if B % bt != 0 or (bt % 8 != 0 and bt != B):
        bt = B  # fall back to a single block for awkward batch sizes
    grid = (B // bt,)
    rows, width = packed_w.shape
    kernel = functools.partial(
        affine_coupling_kernel, half=half, hidden=hidden, n_hidden=n_hidden)
    return pl.pallas_call(
        kernel,
        out_shape=jax.ShapeDtypeStruct((B, D), z.dtype),
        grid=grid,
        in_specs=[
            pl.BlockSpec((bt, D), lambda i: (i, 0)),
            # Whole packed weight slab resident in VMEM; same block every
            # grid step, so it is DMA'd once.
            pl.BlockSpec((rows, width), lambda i: (0, 0)),
        ],
        out_specs=pl.BlockSpec((bt, D), lambda i: (i, 0)),
        compiler_params=pltpu.CompilerParams(
            dimension_semantics=("parallel",)),
    )(z, packed_w)


def affine_coupling_ref(z, s_params, b_params):
    """Pure-JAX reference for correctness checking (unfused networks)."""
    def mlp(x, params):
        w_in, b_in, w_hid, b_hid, w_out, b_out = params
        h = jnp.maximum(x @ w_in + b_in, 0.0)
        for l in range(w_hid.shape[0]):
            h = jnp.maximum(h @ w_hid[l] + b_hid[l][None, :], 0.0)
        return h @ w_out + b_out

    D = z.shape[1]
    half = D // 2
    left, right = z[:, :half], z[:, half:]
    log_s = mlp(left, s_params)
    b = mlp(left, b_params)
    return jnp.concatenate([left, right * jnp.exp(log_s) + b], axis=1)


if __name__ == "__main__":
    key = jax.random.PRNGKey(0)
    k_z, k_s, k_b = jax.random.split(key, 3)

    batch, input_dim, hidden_dim, num_hidden_layers = 8, 16, 8, 5
    half = input_dim // 2

    z = jax.random.normal(k_z, (batch, input_dim), jnp.float32)
    s_params = make_scale_network_params(k_s, half, hidden_dim, num_hidden_layers)
    b_params = make_scale_network_params(k_b, half, hidden_dim, num_hidden_layers)

    packed_w = pack_coupling_params(s_params, b_params)

    out = affine_coupling_forward(
        z, packed_w, half=half, hidden=hidden_dim, n_hidden=num_hidden_layers)
    out = jax.block_until_ready(out)

    ref = affine_coupling_ref(z, s_params, b_params)
    assert out.shape == (batch, input_dim)
    assert jnp.allclose(out, ref, atol=1e-5, rtol=1e-5), "mismatch vs reference"

    print("KERNEL_OK")
</pallas_src>

<mosaic_0001>
module attributes {stable_mosaic.version = 11 : i64} {
  func.func @affine_coupling_kernel(%arg0: i32, %arg1: memref<8x16xf32, #tpu.memory_space<vmem>>, %arg2: memref<160x16xf32, #tpu.memory_space<vmem>>, %arg3: memref<8x16xf32, #tpu.memory_space<vmem>>) attributes {dimension_semantics = [#tpu.dimension_semantics<parallel>], iteration_bounds = array<i64: 1>, scalar_prefetch = 0 : i64, scratch_operands = 0 : i64, tpu.core_type = #tpu.core_type<tc>, window_params = [{transform_indices = @transform_0, window_bounds = array<i64: 8, 16>}, {pipeline_mode = #tpu.pipeline_mode<synchronous>, transform_indices = @transform_1, window_bounds = array<i64: 160, 16>}, {transform_indices = @transform_2, window_bounds = array<i64: 8, 16>}]} {
    %c0 = arith.constant 0 : index
    %c0_0 = arith.constant 0 : index
    %0 = vector.load %arg1[%c0, %c0_0] : memref<8x16xf32, #tpu.memory_space<vmem>>, vector<8x8xf32>
    %c0_1 = arith.constant 0 : index
    %c8 = arith.constant 8 : index
    %1 = vector.load %arg1[%c0_1, %c8] : memref<8x16xf32, #tpu.memory_space<vmem>>, vector<8x8xf32>
    %c0_2 = arith.constant 0 : index
    %c0_3 = arith.constant 0 : index
    %2 = vector.load %arg2[%c0_2, %c0_3] : memref<160x16xf32, #tpu.memory_space<vmem>>, vector<8x16xf32>
    %c8_4 = arith.constant 8 : index
    %c0_5 = arith.constant 0 : index
    %3 = vector.load %arg2[%c8_4, %c0_5] : memref<160x16xf32, #tpu.memory_space<vmem>>, vector<1x16xf32>
    %cst = arith.constant dense<0.000000e+00> : vector<8x16xf32>
    %4 = tpu.matmul %0, %2, %cst {dimension_numbers = #tpu.dot_dimension_numbers<[1], [0], [0], [1], [0, 0, 1, 1], [], []>} : vector<8x8xf32>, vector<8x16xf32>, vector<8x16xf32> -> vector<8x16xf32>
    %5 = vector.broadcast %3 : vector<1x16xf32> to vector<8x16xf32>
    %6 = arith.addf %4, %5 : vector<8x16xf32>
    %cst_6 = arith.constant 0.000000e+00 : f32
    %7 = vector.broadcast %cst_6 : f32 to vector<8x16xf32>
    %8 = arith.maximumf %6, %7 : vector<8x16xf32>
    %c16 = arith.constant 16 : index
    %c0_7 = arith.constant 0 : index
    %9 = vector.load %arg2[%c16, %c0_7] : memref<160x16xf32, #tpu.memory_space<vmem>>, vector<16x16xf32>
    %c32 = arith.constant 32 : index
    %c0_8 = arith.constant 0 : index
    %10 = vector.load %arg2[%c32, %c0_8] : memref<160x16xf32, #tpu.memory_space<vmem>>, vector<1x16xf32>
    %cst_9 = arith.constant dense<0.000000e+00> : vector<8x16xf32>
    %11 = tpu.matmul %8, %9, %cst_9 {dimension_numbers = #tpu.dot_dimension_numbers<[1], [0], [0], [1], [0, 0, 1, 1], [], []>} : vector<8x16xf32>, vector<16x16xf32>, vector<8x16xf32> -> vector<8x16xf32>
    %12 = vector.broadcast %10 : vector<1x16xf32> to vector<8x16xf32>
    %13 = arith.addf %11, %12 : vector<8x16xf32>
    %cst_10 = arith.constant 0.000000e+00 : f32
    %14 = vector.broadcast %cst_10 : f32 to vector<8x16xf32>
    %15 = arith.maximumf %13, %14 : vector<8x16xf32>
    %c40 = arith.constant 40 : index
    %c0_11 = arith.constant 0 : index
    %16 = vector.load %arg2[%c40, %c0_11] : memref<160x16xf32, #tpu.memory_space<vmem>>, vector<16x16xf32>
    %c56 = arith.constant 56 : index
    %c0_12 = arith.constant 0 : index
    %17 = vector.load %arg2[%c56, %c0_12] : memref<160x16xf32, #tpu.memory_space<vmem>>, vector<1x16xf32>
    %cst_13 = arith.constant dense<0.000000e+00> : vector<8x16xf32>
    %18 = tpu.matmul %15, %16, %cst_13 {dimension_numbers = #tpu.dot_dimension_numbers<[1], [0], [0], [1], [0, 0, 1, 1], [], []>} : vector<8x16xf32>, vector<16x16xf32>, vector<8x16xf32> -> vector<8x16xf32>
    %19 = vector.broadcast %17 : vector<1x16xf32> to vector<8x16xf32>
    %20 = arith.addf %18, %19 : vector<8x16xf32>
    %cst_14 = arith.constant 0.000000e+00 : f32
    %21 = vector.broadcast %cst_14 : f32 to vector<8x16xf32>
    %22 = arith.maximumf %20, %21 : vector<8x16xf32>
    %c64 = arith.constant 64 : index
    %c0_15 = arith.constant 0 : index
    %23 = vector.load %arg2[%c64, %c0_15] : memref<160x16xf32, #tpu.memory_space<vmem>>, vector<16x16xf32>
    %c80 = arith.constant 80 : index
    %c0_16 = arith.constant 0 : index
    %24 = vector.load %arg2[%c80, %c0_16] : memref<160x16xf32, #tpu.memory_space<vmem>>, vector<1x16xf32>
    %cst_17 = arith.constant dense<0.000000e+00> : vector<8x16xf32>
    %25 = tpu.matmul %22, %23, %cst_17 {dimension_numbers = #tpu.dot_dimension_numbers<[1], [0], [0], [1], [0, 0, 1, 1], [], []>} : vector<8x16xf32>, vector<16x16xf32>, vector<8x16xf32> -> vector<8x16xf32>
    %26 = vector.broadcast %24 : vector<1x16xf32> to vector<8x16xf32>
    %27 = arith.addf %25, %26 : vector<8x16xf32>
    %cst_18 = arith.constant 0.000000e+00 : f32
    %28 = vector.broadcast %cst_18 : f32 to vector<8x16xf32>
    %29 = arith.maximumf %27, %28 : vector<8x16xf32>
    %c88 = arith.constant 88 : index
    %c0_19 = arith.constant 0 : index
    %30 = vector.load %arg2[%c88, %c0_19] : memref<160x16xf32, #tpu.memory_space<vmem>>, vector<16x16xf32>
    %c104 = arith.constant 104 : index
    %c0_20 = arith.constant 0 : index
    %31 = vector.load %arg2[%c104, %c0_20] : memref<160x16xf32, #tpu.memory_space<vmem>>, vector<1x16xf32>
    %cst_21 = arith.constant dense<0.000000e+00> : vector<8x16xf32>
    %32 = tpu.matmul %29, %30, %cst_21 {dimension_numbers = #tpu.dot_dimension_numbers<[1], [0], [0], [1], [0, 0, 1, 1], [], []>} : vector<8x16xf32>, vector<16x16xf32>, vector<8x16xf32> -> vector<8x16xf32>
    %33 = vector.broadcast %31 : vector<1x16xf32> to vector<8x16xf32>
    %34 = arith.addf %32, %33 : vector<8x16xf32>
    %cst_22 = arith.constant 0.000000e+00 : f32
    %35 = vector.broadcast %cst_22 : f32 to vector<8x16xf32>
    %36 = arith.maximumf %34, %35 : vector<8x16xf32>
    %c112 = arith.constant 112 : index
    %c0_23 = arith.constant 0 : index
    %37 = vector.load %arg2[%c112, %c0_23] : memref<160x16xf32, #tpu.memory_space<vmem>>, vector<16x16xf32>
    %c128 = arith.constant 128 : index
    %c0_24 = arith.constant 0 : index
    %38 = vector.load %arg2[%c128, %c0_24] : memref<160x16xf32, #tpu.memory_space<vmem>>, vector<1x16xf32>
    %cst_25 = arith.constant dense<0.000000e+00> : vector<8x16xf32>
    %39 = tpu.matmul %36, %37, %cst_25 {dimension_numbers = #tpu.dot_dimension_numbers<[1], [0], [0], [1], [0, 0, 1, 1], [], []>} : vector<8x16xf32>, vector<16x16xf32>, vector<8x16xf32> -> vector<8x16xf32>
    %40 = vector.broadcast %38 : vector<1x16xf32> to vector<8x16xf32>
    %41 = arith.addf %39, %40 : vector<8x16xf32>
    %cst_26 = arith.constant 0.000000e+00 : f32
    %42 = vector.broadcast %cst_26 : f32 to vector<8x16xf32>
    %43 = arith.maximumf %41, %42 : vector<8x16xf32>
    %c136 = arith.constant 136 : index
    %c0_27 = arith.constant 0 : index
    %44 = vector.load %arg2[%c136, %c0_27] : memref<160x16xf32, #tpu.memory_space<vmem>>, vector<16x16xf32>
    %c152 = arith.constant 152 : index
    %c0_28 = arith.constant 0 : index
    %45 = vector.load %arg2[%c152, %c0_28] : memref<160x16xf32, #tpu.memory_space<vmem>>, vector<1x16xf32>
    %cst_29 = arith.constant dense<0.000000e+00> : vector<8x16xf32>
    %46 = tpu.matmul %43, %44, %cst_29 {dimension_numbers = #tpu.dot_dimension_numbers<[1], [0], [0], [1], [0, 0, 1, 1], [], []>} : vector<8x16xf32>, vector<16x16xf32>, vector<8x16xf32> -> vector<8x16xf32>
    %47 = vector.broadcast %45 : vector<1x16xf32> to vector<8x16xf32>
    %48 = arith.addf %46, %47 : vector<8x16xf32>
    %49 = vector.extract_strided_slice %48 {offsets = [0, 0], sizes = [8, 8], strides = [1, 1]} : vector<8x16xf32> to vector<8x8xf32>
    %50 = vector.extract_strided_slice %48 {offsets = [0, 8], sizes = [8, 8], strides = [1, 1]} : vector<8x16xf32> to vector<8x8xf32>
    %51 = math.exp %49 : vector<8x8xf32>
    %52 = arith.mulf %1, %51 : vector<8x8xf32>
    %53 = arith.addf %52, %50 : vector<8x8xf32>
    %54 = tpu.concatenate %0, %53 in 1 : vector<8x8xf32>, vector<8x8xf32> -> vector<8x16xf32>
    %c0_30 = arith.constant 0 : index
    %c0_31 = arith.constant 0 : index
    %55 = vector.load %arg3[%c0_30, %c0_31] : memref<8x16xf32, #tpu.memory_space<vmem>>, vector<8x16xf32>
    tpu.vector_store %arg3[%c0_30, %c0_31], %54 {strides = array<i32>} : memref<8x16xf32, #tpu.memory_space<vmem>>, vector<8x16xf32>,
    return
  }
  func.func @transform_0(%arg0: i32) -> (i32, i32) {
    %c0_i32 = arith.constant 0 : i32
    %c0_i32_0 = arith.constant 0 : i32
    return %arg0, %c0_i32 : i32, i32
  }
  func.func @transform_1(%arg0: i32) -> (i32, i32) {
    %c0_i32 = arith.constant 0 : i32
    %c0_i32_0 = arith.constant 0 : i32
    %c0_i32_1 = arith.constant 0 : i32
    return %c0_i32, %c0_i32_0 : i32, i32
  }
  func.func @transform_2(%arg0: i32) -> (i32, i32) {
    %c0_i32 = arith.constant 0 : i32
    %c0_i32_0 = arith.constant 0 : i32
    return %arg0, %c0_i32 : i32, i32
  }
}

</mosaic_0001>

<bundles_post_ra>
// kernel: tpu_custom_call.1
= control target key start
LH: loop header
LB: loop body
LE: loop exit
PB: predicated region body
PF: predicated region fallthrough
CT: control target
= control target key end

     0   :  { %vm16_vm0 = vcmask 64512   ;;  %s376_s0 = inlined_call_operand.vmem [shape: f32[8,16], index: 0, kind: input, shape index: {}]   ;;  %s377_s1 = inlined_call_operand.vmem [shape: f32[160,16], index: 1, kind: input, shape index: {}]   ;;  %s378_s2 = inlined_call_operand.hbm [shape: f32[8,16], index: 2, kind: output, shape index: {}]  }
   0x1   :  { %v13_v0 = vld [vmem:[%s377_s1] sm:$0xff] }
   0x2   :  { %v302_v1 = vld [vmem:[%s376_s0] sm:$0xff]  ;;  %35 = vmatpush.msra.mxu0 %v13_v0 }
   0x3   :  { %235 = vmatmul.msk.f32.vlgmr.msra.gmra.mxu0 %vm16_vm0, %v302_v1 }
   0x4   :  { %7 = vsyncpa [#allocation3], 0  ;;  %v42_v2 = vld [vmem:[%s377_s1 + $0x18] sm:$0xff]  ;;  %v41_v3 = vld [vmem:[%s377_s1 + $0x10] sm:$0xff]  ;;  %vm45_vm1 = vcmask 130048   ;;  %s279_s21 = smov 8  }
   0x5   :  { %63 = vmatpush.msra.mxu1 %v42_v2  ;;  %v244_v4 = vld [vmem:[%s377_s1 + $0x8] ss:$0 sm:$0xff]  ;;  %v71_v8 = vld [vmem:[%s377_s1 + $0x30] sm:$0xff]  ;;  %v245_v10 = vld [vmem:[%s377_s1 + $0x20] ss:$0 sm:$0xff]  ;;  %s280_s22 = smov [#allocation2]  }
   0x6   :  { %91 = vmatpush.msra.mxu2 %v71_v8  ;;  %v70_v9 = vld [vmem:[%s377_s1 + $0x28] sm:$0xff]  ;;  %v98_v15 = vld [vmem:[%s377_s1 + $0x40] sm:$0xff]  ;;  %v246_v17 = vld [vmem:[%s377_s1 + $0x38] ss:$0 sm:$0xff]  ;;  %s224_s23 = sshll.u32 %s280_s22, 4  ;;  %s226_s26 = sshll.u32 %s378_s2, 4  ;;  %s225_s23 = int_to_ptr.vmem [resolvable:$true] %s224_s23  ;;  %s227_s26 = int_to_ptr.hbm [resolvable:$true] %s226_s26 }
   0x7   :  { %64 = vmatpush.msra.mxu1 %v41_v3  ;;  %v99_v14 = vld [vmem:[%s377_s1 + $0x48] sm:$0xff]  ;;  %v127_v16 = vld [vmem:[%s377_s1 + $0x60] sm:$0xff]  ;;  %v126_v21 = vld [vmem:[%s377_s1 + $0x58] sm:$0xff] }
   0x8   :  { %92 = vmatpush.msra.mxu2 %v70_v9  ;;  %119 = vmatpush.msra.mxu3 %v99_v14  ;;  %v155_v22 = vld [vmem:[%s377_s1 + $0x78] sm:$0xff]  ;;  %v247_v23 = vld [vmem:[%s377_s1 + $0x50] ss:$0 sm:$0xff]  ;;  %v248_v29 = vld [vmem:[%s377_s1 + $0x68] ss:$0 sm:$0xff] }
   0x9   :  { %147 = vmatpush.msrb.mxu0 %v127_v16  ;;  %175 = vmatpush.msrb.mxu1 %v155_v22  ;;  %v154_v27 = vld [vmem:[%s377_s1 + $0x70] sm:$0xff]  ;;  %v182_v33 = vld [vmem:[%s377_s1 + $0x88] sm:$0xff]  ;;  %v249_v34 = vld [vmem:[%s377_s1 + $0x80] ss:$0 sm:$0xff] }
   0xa   :  { %120 = vmatpush.msra.mxu3 %v98_v15  ;;  %v183_v28 = vld [vmem:[%s377_s1 + $0x90] sm:$0xff]  ;;  %v250_v38 = vld [vmem:[%s377_s1 + $0x98] ss:$0 sm:$0xff] }
   0xb   :  { %148 = vmatpush.msrb.mxu0 %v126_v21  ;;  %176 = vmatpush.msrb.mxu1 %v154_v27 }
   0xc   :  { %203 = vmatpush.msrb.mxu2 %v183_v28 }
   0xe   :  { %204 = vmatpush.msrb.mxu2 %v182_v33 }
  0x80   :  { %v37_v5 = vpop.f32.mrf.mxu0 }
  0x81   :  { %v38_v6 = vadd.f32 %v244_v4, %v37_v5 }
  0x83   :  { %v40_v7 = vmax.f32 %v38_v6, 0.0 }
  0x85   :  { %236 = vmatmul.msk.f32.vlgmr.msra.gmra.mxu1 %vm45_vm1, %v40_v7 }
 0x102   :  { %v66_v11 = vpop.f32.mrf.mxu1 }
 0x103   :  { %v67_v12 = vadd.f32 %v245_v10, %v66_v11 }
 0x105   :  { %v69_v13 = vmax.f32 %v67_v12, 0.0 }
 0x107   :  { %237 = vmatmul.msk.f32.vlgmr.msra.gmra.mxu2 %vm45_vm1, %v69_v13 }
 0x18a   :  { %v94_v18 = vpop.f32.mrf.mxu2 }
 0x18b   :  { %v95_v19 = vadd.f32 %v246_v17, %v94_v18 }
 0x18d   :  { %v97_v20 = vmax.f32 %v95_v19, 0.0 }
 0x18f   :  { %238 = vmatmul.msk.f32.vlgmr.msra.gmra.mxu3 %vm45_vm1, %v97_v20 }
 0x212   :  { %v122_v24 = vpop.f32.mrf.mxu3 }
 0x213   :  { %v123_v25 = vadd.f32 %v247_v23, %v122_v24 }
 0x215   :  { %v125_v26 = vmax.f32 %v123_v25, 0.0 }
 0x217   :  { %239 = vmatmul.msk.f32.vlgmr.msrb.gmra.mxu0 %vm45_vm1, %v125_v26 }
 0x294   :  { %v150_v30 = vpop.f32.mrf.mxu0 }
 0x295   :  { %v151_v31 = vadd.f32 %v248_v29, %v150_v30 }
 0x297   :  { %v153_v32 = vmax.f32 %v151_v31, 0.0 }
 0x299   :  { %240 = vmatmul.msk.f32.vlgmr.msrb.gmra.mxu1 %vm45_vm1, %v153_v32 }
 0x316   :  { %v178_v35 = vpop.f32.mrf.mxu1 }
 0x317   :  { %v179_v36 = vadd.f32 %v249_v34, %v178_v35 }
 0x319   :  { %v181_v37 = vmax.f32 %v179_v36, 0.0 }
 0x31b   :  { %241 = vmatmul.msk.f32.vlgmr.msrb.gmra.mxu2 %vm45_vm1, %v181_v37 }
 0x39e   :  { %v206_v39 = vpop.f32.mrf.mxu2 }
 0x39f   :  { %v207_v40 = vadd.f32 %v250_v38, %v206_v39 }
 0x3a1   :  { %v209_v41 = vmul.f32 1.442695, %v207_v40 }
 0x3a3   :  { %251 = vpow2.f32 %v209_v41 }
 0x3a9   :  { %v252_v42 = vpop.eup %251 }
 0x3aa   :  { %212 = vrot.lane.b32.xlu0 %v252_v42, %s279_s21 }
 0x41c   :  { %v213_v43 = vpop.permute.xlu0 %212 }
 0x41d   :  { %v215_v44 = vmul.f32 %v213_v43, %v302_v1 }
 0x41f   :  { %v216_v45 = vadd.f32 %v215_v44, %v207_v40 }
 0x421   :  { %v217_v46 = vsel %vm16_vm0, %v302_v1, %v216_v45 }
 0x422   :  { %218 = vst.msk [vmem:[#allocation2] sm:$0xff] %vm45_vm1, %v217_v46 }
 0x423   :  { %229 = dma.vmem_to_hbm [thread:$0]  %s225_s23, 128, %s227_s26, [#allocation3]  }
 0x424   :  { %277 = dma.done.wait [#allocation3], 128  }
 0x425   :  { %278 = vsyncadd [#allocation3], 4294967168 }
 0x426   :  { %234 = vsyncpa [#allocation3], 1 }

</bundles_post_ra>
